<compile_context>
chip_gen: v7x
topology: tpu7x:2x2x1
jax: 0.10.0
libtpu: 0.0.40
codegen_flags: <defaults>
</compile_context>

<pallas_src>
import math
import numpy as np

import jax
import jax.numpy as jnp
from jax.experimental import pallas as pl
from jax.experimental.pallas import tpu as pltpu


# ---------------------------------------------------------------------------
# Synthetic SegmentedTensorProduct descriptor
#   coefficient subscripts: "ijk"
#   operand subscripts:     ["iu", "jv", "kuv"]   (3 operands, output last)
# Mimics the structure cuequivariance's stp.SegmentedTensorProduct feeds into
# _tensor_product_fx.
# ---------------------------------------------------------------------------
class Descriptor:
    def __init__(self, operands, paths):
        # operands: list (per operand) of list of segment shapes (tuples)
        # paths:    list of (seg_idx0, seg_idx1, seg_idx_out, coeff ndarray[i,j,k])
        self.operands = operands
        self.paths = paths

    def operand_size(self, oid):
        return sum(int(np.prod(s)) for s in self.operands[oid])

    def segment_offsets(self, oid):
        offs, o = [], 0
        for s in self.operands[oid]:
            offs.append(o)
            o += int(np.prod(s))
        return offs


def make_example_descriptor():
    U, V = 4, 2  # multiplicities ("u" and "v" modes)
    op0 = [(3, U), (1, U)]                               # size 16
    op1 = [(3, V), (1, V)]                               # size 8
    out = [(1, U, V), (3, U, V), (3, U, V), (1, U, V)]   # size 64

    def coeff(pid, shape):
        n = int(np.prod(shape))
        return ((np.arange(n, dtype=np.float32) + 1.0)
                .reshape(shape) * 0.01 * (pid + 1))

    paths = [
        (0, 0, 0, coeff(0, (3, 3, 1))),   # l1 x l1 -> l0
        (0, 0, 1, coeff(1, (3, 3, 3))),   # l1 x l1 -> l1
        (0, 1, 2, coeff(2, (3, 1, 3))),   # l1 x l0 -> l1
        (1, 0, 2, coeff(3, (1, 3, 3))),   # l0 x l1 -> l1 (same output segment)
        (1, 1, 3, coeff(4, (1, 1, 1))),   # l0 x l0 -> l0
    ]
    return Descriptor([op0, op1, out], paths)


# ---------------------------------------------------------------------------
# Glue: densify the descriptor into W[a, b, o]
# ---------------------------------------------------------------------------
def build_dense_w(desc: Descriptor) -> np.ndarray:
    A = desc.operand_size(0)
    B = desc.operand_size(1)
    O = desc.operand_size(2)
    off0 = desc.segment_offsets(0)
    off1 = desc.segment_offsets(1)
    off2 = desc.segment_offsets(2)

    W = np.zeros((A, B, O), dtype=np.float32)
    for (s0, s1, so, C) in desc.paths:
        di, u = desc.operands[0][s0]
        dj, v = desc.operands[1][s1]
        dk, u2, v2 = desc.operands[2][so]
        assert u == u2 and v == v2
        eye_u = np.eye(u, dtype=np.float32)
        eye_v = np.eye(v, dtype=np.float32)
        # block[(i,u),(j,v),(k,U,V)] = C[i,j,k] * d(u,U) * d(v,V)
        block = np.einsum("ijk,uU,vV->iujvkUV", C, eye_u, eye_v)
        block = block.reshape(di * u, dj * v, dk * u * v)
        a0, b0, o0 = off0[s0], off1[s1], off2[so]
        W[a0:a0 + di * u, b0:b0 + dj * v, o0:o0 + dk * u * v] += block
    return W


# ---------------------------------------------------------------------------
# Per-descriptor constant cache (content-keyed, built once per config)
# ---------------------------------------------------------------------------
_CONST_CACHE = {}


def _desc_cache_key(desc: Descriptor):
    ops_key = tuple(tuple(tuple(int(d) for d in s) for s in op)
                    for op in desc.operands)
    paths_key = tuple((int(s0), int(s1), int(so), tuple(C.shape),
                       np.asarray(C, np.float32).tobytes())
                      for (s0, s1, so, C) in desc.paths)
    return (ops_key, paths_key)


def _get_kernel_constants(desc: Descriptor, R: int, Oo: int, math_dtype):
    """Returns (E1, W_block) as device arrays in `math_dtype`.

    Lane ordering for the packed outer product: l = b*(R*A) + j*A + a
      (b = x1 feature, j = folded batch row, a = x0 feature).

    E1: (R*B, L) 0/1 matrix with E1[j*B + b, l] = 1     (x1 replication)
    W_block: (L, R*Oo) with WB[l, j*Oo + k] = W[a, b, k] for k < O
             (zero for the Oo-padding columns), so one K=L matmul produces
             the lane-dense packed output of R batch rows.
    """
    key = (_desc_cache_key(desc), R, Oo, jnp.dtype(math_dtype).name)
    if key in _CONST_CACHE:
        return _CONST_CACHE[key]

    A = desc.operand_size(0)
    B = desc.operand_size(1)
    O = desc.operand_size(2)
    RA, RB = R * A, R * B
    L = B * RA

    W = build_dense_w(desc)          # (A, B, O)

    l = np.arange(L)
    b = l // RA
    rem = l % RA
    j = rem // A
    a = rem % A

    E1 = np.zeros((RB, L), dtype=np.float32)
    E1[j * B + b, l] = 1.0

    WB = np.zeros((L, R * Oo), dtype=np.float32)
    WB[l[:, None], (j * Oo)[:, None] + np.arange(O)[None, :]] = W[a, b, :]

    consts = (jnp.asarray(E1, dtype=math_dtype), jnp.asarray(WB, dtype=math_dtype))
    _CONST_CACHE[key] = consts
    return consts


# ---------------------------------------------------------------------------
# Pallas kernel
#   x_ref : (tzr, R*A + R*B)  f32 packed inputs (x0 columns first)
#   e1_ref: (R*B, L)          math_dtype 0/1 expansion for x1
#   w_ref : (L, R*Oo)         math_dtype block weight (lane-dense output)
#   o_ref : (tzr, R*Oo)       f32 output (R*Oo is a multiple of 128)
# ---------------------------------------------------------------------------
def _make_kernel(RA: int, RB: int, B: int, compute_dtype):
    def kernel(x_ref, e1_ref, w_ref, o_ref):
        x = x_ref[...]
        x0 = x[:, :RA].astype(compute_dtype)
        x1 = x[:, RA:RA + RB].astype(compute_dtype)

        # x0 replication (lane ordering l = b*RA + ra):
        #   x0e[z, b*RA + ra] = x0[z, ra]  ->  B lane-copies of the x0 block.
        # Done with a lane concatenate (XLU/VPU shifts + selects), keeping
        # this replication off the MXU (perf-review item 1).
        x0e = jnp.concatenate([x0] * B, axis=-1) if B > 1 else x0

        # x1 replication: one small 0/1 matmul (exact in bf16), K = R*B.
        # TODO(synk): move this last expansion off the MXU too (lane-gather /
        # tpu dynamic_gather) once its Mosaic lowering is verified.
        x1e = jnp.dot(x1, e1_ref[...], preferred_element_type=jnp.float32)

        p = x0e * x1e.astype(compute_dtype)        # per-row outer product

        # Single main MXU contraction: K = L = B*R*A, N = R*Oo (>= 128 lanes).
        acc = jnp.dot(p, w_ref[...], preferred_element_type=jnp.float32)
        o_ref[...] = acc.astype(o_ref.dtype)

    return kernel


def tensor_product_pallas(inputs, desc: Descriptor, *, tz: int = 4096,
                          math_dtype=jnp.bfloat16):
    """Equivalent of TensorProduct.forward(inputs) (FX fallback path) on TPU.

    math_dtype: dtype of the MXU operands (accumulation is always f32).
    bfloat16 (default) is ~2-3x faster on the MXU; float32 is exact.
    """
    x0, x1 = inputs
    A = desc.operand_size(0)
    B = desc.operand_size(1)
    O = desc.operand_size(2)
    assert x0.shape[-1] == A and x1.shape[-1] == B

    # broadcast leading (batch) dims like _Wrapper / _reshape do
    shape = jnp.broadcast_shapes(x0.shape[:-1], x1.shape[:-1])
    Z = int(np.prod(shape)) if len(shape) else 1
    x0 = jnp.broadcast_to(x0, shape + (A,)).reshape(Z, A).astype(jnp.float32)
    x1 = jnp.broadcast_to(x1, shape + (B,)).reshape(Z, B).astype(jnp.float32)

    # Lane-dense output packing: fold R batch rows per kernel row so the
    # output block minor dim R*Oo is a multiple of 128 (unmasked vst).  When
    # O does not divide 128, pad the output columns instead (stripped below).
    if O < 128 and 128 % O == 0:
        R, Oo = 128 // O, O
    else:
        R, Oo = 1, ((O + 127) // 128) * 128

    RA, RB = R * A, R * B
    L = B * RA
    e1, wb = _get_kernel_constants(desc, R, Oo, math_dtype)

    # Packed-row tiling: large tiles amortize the ~0.35us/step pipeline
    # overhead; cap for small batches so padding is at most one tile.
    Zr = -(-Z // R)                           # packed rows needed
    tzr = max(8, tz // R)                     # packed rows per tile (sweepable)
    tzr = min(tzr, ((Zr + 7) // 8) * 8)       # don't overshoot small batches
    Zr_p = ((Zr + tzr - 1) // tzr) * tzr      # whole number of tiles
    Zp = Zr_p * R

    if Zp != Z:
        x0 = jnp.pad(x0, ((0, Zp - Z), (0, 0)))
        x1 = jnp.pad(x1, ((0, Zp - Z), (0, 0)))

    # Free row-major reshapes (R consecutive batch rows per packed row) and a
    # single packed input array -> one DMA stream per tile.
    xin = jnp.concatenate([x0.reshape(Zr_p, RA), x1.reshape(Zr_p, RB)], axis=-1)

    cost = pl.CostEstimate(
        flops=2 * Zr_p * L * (RB + R * Oo) + Zr_p * L,
        transcendentals=0,
        bytes_accessed=(xin.size * 4 + Zr_p * R * Oo * 4
                        + e1.size * e1.dtype.itemsize
                        + wb.size * wb.dtype.itemsize),
    )

    kernel = _make_kernel(RA, RB, B, jnp.dtype(math_dtype))

    out = pl.pallas_call(
        kernel,
        out_shape=jax.ShapeDtypeStruct((Zr_p, R * Oo), jnp.float32),
        grid_spec=pltpu.PrefetchScalarGridSpec(
            num_scalar_prefetch=0,
            grid=(Zr_p // tzr,),
            in_specs=[
                pl.BlockSpec((tzr, RA + RB), lambda i: (i, 0)),
                # grid-invariant constants (index_map always (0, 0))
                pl.BlockSpec((RB, L), lambda i: (0, 0)),
                pl.BlockSpec((L, R * Oo), lambda i: (0, 0)),
            ],
            out_specs=pl.BlockSpec((tzr, R * Oo), lambda i: (i, 0)),
        ),
        compiler_params=pltpu.CompilerParams(
            # single batch axis: megacore / v7x dual-TC sharding
            dimension_semantics=("parallel",),
            # explicit scoped-VMEM budget (v5e default is only 16 MiB);
            # ~10 MiB actual footprint at tzr=2048, well under 64 MiB v7x VMEM.
            vmem_limit_bytes=32 * 1024 * 1024,
        ),
        cost_estimate=cost,
    )(xin, e1, wb)

    # Unpack (free reshape), strip padded rows/columns, restore batch shape.
    return out.reshape(Zp, Oo)[:Z, :O].reshape(shape + (O,))
    # TODO(synk): for very large descriptors (L or R*Oo too big for VMEM),
    # tile W_block along its output columns as an extra "arbitrary" grid axis
    # instead of keeping it fully VMEM-resident.


# ---------------------------------------------------------------------------
# Pure-JAX reference replicating the FX-fallback path-by-path semantics
# (einsum per path, sum per output segment, concat along last axis).
# ---------------------------------------------------------------------------
def tensor_product_reference(inputs, desc: Descriptor):
    x0, x1 = inputs
    A = desc.operand_size(0)
    B = desc.operand_size(1)
    O = desc.operand_size(2)
    shape = jnp.broadcast_shapes(x0.shape[:-1], x1.shape[:-1])
    Z = int(np.prod(shape)) if len(shape) else 1
    x0 = jnp.broadcast_to(x0, shape + (A,)).reshape(Z, A).astype(jnp.float32)
    x1 = jnp.broadcast_to(x1, shape + (B,)).reshape(Z, B).astype(jnp.float32)

    off0 = desc.segment_offsets(0)
    off1 = desc.segment_offsets(1)
    off2 = desc.segment_offsets(2)

    out = jnp.zeros((Z, O), dtype=jnp.float32)
    for (s0, s1, so, C) in desc.paths:
        di, u = desc.operands[0][s0]
        dj, v = desc.operands[1][s1]
        dk, _, _ = desc.operands[2][so]
        seg0 = x0[:, off0[s0]:off0[s0] + di * u].reshape(Z, di, u)
        seg1 = x1[:, off1[s1]:off1[s1] + dj * v].reshape(Z, dj, v)
        # formula "ijk,Ziu,Zjv->Zkuv" as in _tensor_product_fx
        o_path = jnp.einsum("ijk,ziu,zjv->zkuv", jnp.asarray(C), seg0, seg1)
        o_path = o_path.reshape(Z, dk * u * v)
        out = out.at[:, off2[so]:off2[so] + dk * u * v].add(o_path)
    return out.reshape(shape + (O,))


if __name__ == "__main__":
    desc = make_example_descriptor()
    A = desc.operand_size(0)   # 16
    B = desc.operand_size(1)   # 8
    O = desc.operand_size(2)   # 64

    key = jax.random.PRNGKey(0)
    k0, k1 = jax.random.split(key)
    batch = 64
    x0 = jax.random.normal(k0, (batch, A), dtype=jnp.float32)
    x1 = jax.random.normal(k1, (batch, B), dtype=jnp.float32)

    ref = jax.block_until_ready(tensor_product_reference([x0, x1], desc))

    # Exact path: f32 MXU operands -> tight tolerance.
    out_f32 = jax.block_until_ready(
        tensor_product_pallas([x0, x1], desc, math_dtype=jnp.float32))
    np.testing.assert_allclose(np.asarray(out_f32), np.asarray(ref),
                               rtol=1e-4, atol=1e-4)

    # Fast path (default): bf16 MXU operands, f32 accumulation.
    out_bf16 = jax.block_until_ready(tensor_product_pallas([x0, x1], desc))
    np.testing.assert_allclose(np.asarray(out_bf16), np.asarray(ref),
                               rtol=5e-2, atol=1e-1)

    assert out_bf16.shape == (batch, O)
    print("KERNEL_OK")
</pallas_src>

<mosaic_0001>
module attributes {stable_mosaic.version = 11 : i64} {
  func.func @kernel(%arg0: i32, %arg1: memref<32x48xf32, #tpu.memory_space<vmem>>, %arg2: memref<16x256xf32, #tpu.memory_space<vmem>>, %arg3: memref<256x128xf32, #tpu.memory_space<vmem>>, %arg4: memref<32x128xf32, #tpu.memory_space<vmem>>) attributes {dimension_semantics = [#tpu.dimension_semantics<parallel>], iteration_bounds = array<i64: 1>, scalar_prefetch = 0 : i64, scratch_operands = 0 : i64, tpu.core_type = #tpu.core_type<tc>, window_params = [{transform_indices = @transform_0, window_bounds = array<i64: 32, 48>}, {pipeline_mode = #tpu.pipeline_mode<synchronous>, transform_indices = @transform_1, window_bounds = array<i64: 16, 256>}, {pipeline_mode = #tpu.pipeline_mode<synchronous>, transform_indices = @transform_2, window_bounds = array<i64: 256, 128>}, {transform_indices = @transform_3, window_bounds = array<i64: 32, 128>}]} {
    %c0 = arith.constant 0 : index
    %c0_0 = arith.constant 0 : index
    %0 = vector.load %arg1[%c0, %c0_0] : memref<32x48xf32, #tpu.memory_space<vmem>>, vector<32x48xf32>
    %1 = vector.extract_strided_slice %0 {offsets = [0, 0], sizes = [32, 32], strides = [1, 1]} : vector<32x48xf32> to vector<32x32xf32>
    %2 = vector.extract_strided_slice %0 {offsets = [0, 32], sizes = [32, 16], strides = [1, 1]} : vector<32x48xf32> to vector<32x16xf32>
    %3 = tpu.concatenate %1, %1, %1, %1, %1, %1, %1, %1 in 1 : vector<32x32xf32>, vector<32x32xf32>, vector<32x32xf32>, vector<32x32xf32>, vector<32x32xf32>, vector<32x32xf32>, vector<32x32xf32>, vector<32x32xf32> -> vector<32x256xf32>
    %c0_1 = arith.constant 0 : index
    %c0_2 = arith.constant 0 : index
    %4 = vector.load %arg2[%c0_1, %c0_2] : memref<16x256xf32, #tpu.memory_space<vmem>>, vector<16x256xf32>
    %cst = arith.constant dense<0.000000e+00> : vector<32x256xf32>
    %5 = tpu.matmul %2, %4, %cst {dimension_numbers = #tpu.dot_dimension_numbers<[1], [0], [0], [1], [0, 0, 1, 1], [], []>} : vector<32x16xf32>, vector<16x256xf32>, vector<32x256xf32> -> vector<32x256xf32>
    %6 = arith.mulf %3, %5 : vector<32x256xf32>
    %c0_3 = arith.constant 0 : index
    %c0_4 = arith.constant 0 : index
    %7 = vector.load %arg3[%c0_3, %c0_4] : memref<256x128xf32, #tpu.memory_space<vmem>>, vector<256x128xf32>
    %cst_5 = arith.constant dense<0.000000e+00> : vector<32x128xf32>
    %8 = tpu.matmul %6, %7, %cst_5 {dimension_numbers = #tpu.dot_dimension_numbers<[1], [0], [0], [1], [0, 0, 1, 1], [], []>} : vector<32x256xf32>, vector<256x128xf32>, vector<32x128xf32> -> vector<32x128xf32>
    %c0_6 = arith.constant 0 : index
    %c0_7 = arith.constant 0 : index
    %9 = vector.load %arg4[%c0_6, %c0_7] : memref<32x128xf32, #tpu.memory_space<vmem>>, vector<32x128xf32>
    tpu.vector_store %arg4[%c0_6, %c0_7], %8 {strides = array<i32>} : memref<32x128xf32, #tpu.memory_space<vmem>>, vector<32x128xf32>,
    return
  }
  func.func @transform_0(%arg0: i32) -> (i32, i32) {
    %c0_i32 = arith.constant 0 : i32
    %c0_i32_0 = arith.constant 0 : i32
    return %arg0, %c0_i32 : i32, i32
  }
  func.func @transform_1(%arg0: i32) -> (i32, i32) {
    %c0_i32 = arith.constant 0 : i32
    %c0_i32_0 = arith.constant 0 : i32
    %c0_i32_1 = arith.constant 0 : i32
    return %c0_i32, %c0_i32_0 : i32, i32
  }
  func.func @transform_2(%arg0: i32) -> (i32, i32) {
    %c0_i32 = arith.constant 0 : i32
    %c0_i32_0 = arith.constant 0 : i32
    %c0_i32_1 = arith.constant 0 : i32
    return %c0_i32, %c0_i32_0 : i32, i32
  }
  func.func @transform_3(%arg0: i32) -> (i32, i32) {
    %c0_i32 = arith.constant 0 : i32
    %c0_i32_0 = arith.constant 0 : i32
    return %arg0, %c0_i32 : i32, i32
  }
}

</mosaic_0001>

<bundles_post_ra>
// kernel: tpu_custom_call.1
= control target key start
LH: loop header
LB: loop body
LE: loop exit
PB: predicated region body
PF: predicated region fallthrough
CT: control target
= control target key end

     0   :  { %8 = vsyncpa [#allocation3], 0  ;;  %s707_s0 = inlined_call_operand.hbm [shape: f32[32,48], index: 0, kind: input, shape index: {}]   ;;  %s708_s1 = inlined_call_operand.hbm [shape: f32[16,256], index: 1, kind: input, shape index: {}]   ;;  %s709_s2 = inlined_call_operand.hbm [shape: f32[256,128], index: 2, kind: input, shape index: {}]   ;;  %s710_s3 = inlined_call_operand.hbm [shape: f32[32,128], index: 3, kind: output, shape index: {}]  }
   0x1   :  { %9 = vsyncpa [#allocation6], 0 }
   0x2   :  { %10 = vsyncpa [#allocation4], 0  ;;  %s570_s12 = smov [#allocation5]   ;;  %s476_s16 = scalar_lea.hbm %s708_s1, 512 }
   0x3   :  { %s28_s13 = sshll.u32 %s570_s12, 4  ;;  %p477_p0 = scmp.ne.s32.totalorder %s708_s1, %s476_s16  ;;  %s29_s13 = int_to_ptr.vmem [resolvable:$true] %s28_s13 }
   0x4   :  { %p480_p1 = scmp.lt.u32.totalorder %s476_s16, %s708_s1 }
   0x6   :  { %p482_p2 = pnand %p480_p1, %p477_p0 }
   0x8   :  { %485 = shalt.err (!%p482_p2)
}
   0x9   :  { %s486_s21 = scalar_lea.vmem %s29_s13, 512  ;;  %p491_p4 = scmp.lt.s32.totalorder %s29_s13, %s29_s13 }
   0xa   :  { %p487_p3 = scmp.ne.s32.totalorder %s29_s13, %s486_s21  ;;  %p492_p5 = scmp.lt.s32.totalorder %s486_s21, %s486_s21 }
   0xc   :  { %p493_p6 = por %p492_p5, %p491_p4 }
   0xe   :  { %p494_p7 = pnand %p493_p6, %p487_p3 }
  0x10   :  { %497 = shalt.err (!%p494_p7)
}
  0x11   :  { %s571_s22 = smov 256   ;;  %s572_s23 = smov 16  }
  0x12   :  { %34 = dma.hbm_to_vmem [thread:$0]  %s708_s1, 512, %s29_s13, [#allocation6], %s571_s22, %s571_s22, %s572_s23  }
  0x13   :  { %s573_s26 = smov [#allocation2]   ;;  %s498_s30 = scalar_lea.hbm %s707_s0, 512 }
  0x14   :  { %s16_s27 = sshll.u32 %s573_s26, 4  ;;  %p499_p8 = scmp.ne.s32.totalorder %s707_s0, %s498_s30  ;;  %s17_s27 = int_to_ptr.vmem [resolvable:$true] %s16_s27 }
  0x15   :  { %p502_p9 = scmp.lt.u32.totalorder %s498_s30, %s707_s0 }
  0x17   :  { %p504_p10 = pnand %p502_p9, %p499_p8 }
  0x19   :  { %507 = shalt.err (!%p504_p10)
}
  0x1a   :  { %s508_s8 = scalar_lea.vmem %s17_s27, 512  ;;  %p513_p12 = scmp.lt.s32.totalorder %s17_s27, %s17_s27 }
  0x1b   :  { %p509_p11 = scmp.ne.s32.totalorder %s17_s27, %s508_s8  ;;  %p514_p13 = scmp.lt.s32.totalorder %s508_s8, %s508_s8 }
  0x1d   :  { %p515_p0 = por %p514_p13, %p513_p12 }
  0x1f   :  { %p516_p1 = pnand %p515_p0, %p509_p11 }
  0x21   :  { %519 = shalt.err (!%p516_p1)
}
  0x22   :  { %s574_s1 = smov 128   ;;  %s575_s9 = smov 8  }
  0x23   :  { %22 = dma.hbm_to_vmem [thread:$0]  %s707_s0, 512, %s17_s27, [#allocation3], %s574_s1, %s574_s1, %s575_s9  }
  0x24   :  { %s576_s12 = smov [#allocation7]   ;;  %s520_s16 = scalar_lea.hbm %s709_s2, 4096 }
  0x25   :  { %s40_s13 = sshll.u32 %s576_s12, 4  ;;  %p521_p2 = scmp.ne.s32.totalorder %s709_s2, %s520_s16  ;;  %s41_s13 = int_to_ptr.vmem [resolvable:$true] %s40_s13 }
  0x26   :  { %p524_p3 = scmp.lt.u32.totalorder %s520_s16, %s709_s2 }
  0x28   :  { %p526_p4 = pnand %p524_p3, %p521_p2 }
  0x2a   :  { %529 = shalt.err (!%p526_p4)
}
  0x2b   :  { %s530_s21 = scalar_lea.vmem %s41_s13, 4096  ;;  %p535_p6 = scmp.lt.s32.totalorder %s41_s13, %s41_s13 }
  0x2c   :  { %p531_p5 = scmp.ne.s32.totalorder %s41_s13, %s530_s21  ;;  %p536_p7 = scmp.lt.s32.totalorder %s530_s21, %s530_s21 }
  0x2e   :  { %p537_p8 = por %p536_p7, %p535_p6 }
  0x30   :  { %p538_p9 = pnand %p537_p8, %p531_p5 }
  0x32   :  { %541 = shalt.err (!%p538_p9)
}
  0x33   :  { %46 = dma.hbm_to_vmem [thread:$0]  %s709_s2, 4096, %s41_s13, [#allocation6], %s574_s1, %s574_s1, %s575_s9  }
  0x34   :  { %564 = dma.done.wait [#allocation3], 512  }
  0x35   :  { %565 = vsyncadd [#allocation3], 4294966784 }
  0x36   :  { %566 = dma.done.wait [#allocation6], 4608  }
  0x37   :  { %567 = vsyncadd [#allocation6], 4294962688  ;;  %v577_v0 = vmov 0.0   ;;  %v645_v1 = vld [vmem:[#allocation2 + $0x10] sm:$0xff]  ;;  %v647_v2 = vld [vmem:[#allocation2] sm:$0xff]  ;;  %s578_s23 = smov 96  }
  0x38   :  { %192 = vmatprep.mubr.f32.mxu0 %v577_v0  ;;  %92 = vrot.lane.b32.xlu1 %v645_v1, %s578_s23  ;;  %v651_v3 = vld [vmem:[#allocation2 + $0x18] sm:$0xff]  ;;  %v116_v4 = vld [vmem:[#allocation5 + $0x8] sm:$0xff]  ;;  %v115_v8 = vld [vmem:[#allocation5] sm:$0xff]  ;;  %s579_s2 = smov 64   ;;  %s580_s24 = smov 32   ;;  %vm119_vm0 = vcmask 130048  }
  0x39   :  { %88 = vrot.lane.b32.xlu0 %v647_v2, %s578_s23  ;;  %v118_v5 = vld [vmem:[#allocation5 + $0x18] sm:$0xff]  ;;  %v653_v6 = vld [vmem:[#allocation2 + $0x8] sm:$0xff]  ;;  %v117_v9 = vld [vmem:[#allocation5 + $0x10] sm:$0xff]  ;;  %vm100_vm1 = vcmask 261120   ;;  %vm105_vm2 = vcmask 523264   ;;  %vm110_vm3 = vcmask 785408  }
  0x3a   :  { %v412_v7 = vpack.c.bf16 %v118_v5, %v116_v4  ;;  %v414_v10 = vpack.c.bf16 %v117_v9, %v115_v8  ;;  %v241_v11 = vld [vmem:[#allocation7 + $0x80] sm:$0xff]  ;;  %v242_v12 = vld [vmem:[#allocation7 + $0x88] sm:$0xff]  ;;  %v243_v16 = vld [vmem:[#allocation7 + $0x90] sm:$0xff]  ;;  %s581_s25 = smov [#allocation8]  }
  0x3b   :  { %v225_v13 = vld [vmem:[#allocation7] sm:$0xff]  ;;  %v416_v14 = vpack.c.bf16 %v242_v12, %v241_v11  ;;  %v226_v15 = vld [vmem:[#allocation7 + $0x8] sm:$0xff]  ;;  %v244_v17 = vld [vmem:[#allocation7 + $0x98] sm:$0xff]  ;;  %s351_s26 = sshll.u32 %s581_s25, 4  ;;  %s352_s26 = int_to_ptr.vmem [resolvable:$true] %s351_s26 }
  0x3c   :  { %413 = vmatprep.subr.bf16.mxu0 %v412_v7  ;;  %94 = vrot.lane.b32.xlu1 %v651_v3, %s578_s23  ;;  %v418_v18 = vpack.c.bf16 %v226_v15, %v225_v13  ;;  %v227_v19 = vld [vmem:[#allocation7 + $0x10] sm:$0xff]  ;;  %v228_v20 = vld [vmem:[#allocation7 + $0x18] sm:$0xff]  ;;  %v420_v21 = vpack.c.bf16 %v244_v17, %v243_v16  ;;  %v245_v22 = vld [vmem:[#allocation7 + $0xa0] sm:$0xff]  ;;  %s542_s27 = scalar_lea.vmem %s352_s26, 512  ;;  %p547_p11 = scmp.lt.s32.totalorder %s352_s26, %s352_s26 }
  0x3d   :  { %90 = vrot.lane.b32.xlu0 %v653_v6, %s578_s23  ;;  %415 = vmatpush1.bf16.msra.mxu0 %v414_v10  ;;  %v246_v23 = vld [vmem:[#allocation7 + $0xa8] sm:$0xff]  ;;  %v422_v24 = vpack.c.bf16 %v228_v20, %v227_v19  ;;  %v229_v25 = vld [vmem:[#allocation7 + $0x20] sm:$0xff]  ;;  %v247_v28 = vld [vmem:[#allocation7 + $0xb0] sm:$0xff]  ;;  %p543_p10 = scmp.ne.s32.totalorder %s352_s26, %s542_s27  ;;  %p548_p12 = scmp.lt.s32.totalorder %s542_s27, %s542_s27 }
  0x3e   :  { %417 = vmatprep.subr.bf16.mxu0 %v416_v14  ;;  %448 = vmatprep.subr.bf16.mxu1 %v416_v14  ;;  %v230_v26 = vld [vmem:[#allocation7 + $0x28] sm:$0xff]  ;;  %v424_v27 = vpack.c.bf16 %v246_v23, %v245_v22  ;;  %v248_v29 = vld [vmem:[#allocation7 + $0xb8] sm:$0xff]  ;;  %v231_v31 = vld [vmem:[#allocation7 + $0x30] sm:$0xff] }
  0x3f   :  { %456 = vmatpush3.bf16.msra.mxu1 %v418_v18  ;;  %v426_v30 = vpack.c.bf16 %v230_v26, %v229_v25  ;;  %v232_v32 = vld [vmem:[#allocation7 + $0x38] sm:$0xff]  ;;  %v428_v33 = vpack.c.bf16 %v248_v29, %v247_v28  ;;  %v249_v34 = vld [vmem:[#allocation7 + $0xc0] sm:$0xff]  ;;  %v250_v35 = vld [vmem:[#allocation7 + $0xc8] sm:$0xff]  ;;  %p549_p13 = por %p548_p12, %p547_p11 }
  0x40   :  { %78 = vrot.lane.b32.xlu1 %v653_v6, %s579_s2  ;;  %449 = vmatprep.subr.bf16.mxu1 %v420_v21  ;;  %v430_v36 = vpack.c.bf16 %v232_v32, %v231_v31  ;;  %v432_v37 = vpack.c.bf16 %v250_v35, %v249_v34  ;;  %v233_v38 = vld [vmem:[#allocation7 + $0x40] sm:$0xff]  ;;  %v234_v39 = vld [vmem:[#allocation7 + $0x48] sm:$0xff]  ;;  %v251_v40 = vld [vmem:[#allocation7 + $0xd0] sm:$0xff] }
  0x41   :  { %66 = vrot.lane.b32.xlu0 %v653_v6, %s580_s24  ;;  %v252_v41 = vld [vmem:[#allocation7 + $0xd8] sm:$0xff]  ;;  %v434_v42 = vpack.c.bf16 %v234_v39, %v233_v38  ;;  %v235_v44 = vld [vmem:[#allocation7 + $0x50] sm:$0xff]  ;;  %v253_v46 = vld [vmem:[#allocation7 + $0xe0] sm:$0xff]  ;;  %p550_p0 = pnand %p549_p13, %p543_p10 }
  0x42   :  { %v436_v43 = vpack.c.bf16 %v252_v41, %v251_v40  ;;  %v236_v45 = vld [vmem:[#allocation7 + $0x58] sm:$0xff]  ;;  %v254_v47 = vld [vmem:[#allocation7 + $0xe8] sm:$0xff]  ;;  %v237_v50 = vld [vmem:[#allocation7 + $0x60] sm:$0xff] }
  0x43   :  { %457 = vmatpush3.bf16.msra.mxu1 %v422_v24  ;;  %v438_v48 = vpack.c.bf16 %v236_v45, %v235_v44  ;;  %v440_v49 = vpack.c.bf16 %v254_v47, %v253_v46  ;;  %v238_v51 = vld [vmem:[#allocation7 + $0x68] sm:$0xff]  ;;  %v255_v57 = vld [vmem:[#allocation7 + $0xf0] sm:$0xff]  ;;  %v256_v58 = vld [vmem:[#allocation7 + $0xf8] sm:$0xff] }
  0x44   :  { %80 = vrot.lane.b32.xlu1 %v645_v1, %s579_s2  ;;  %450 = vmatprep.subr.bf16.mxu1 %v424_v27  ;;  %v442_v52 = vpack.c.bf16 %v238_v51, %v237_v50  ;;  %v444_v59 = vpack.c.bf16 %v256_v58, %v255_v57  ;;  %v239_v60 = vld [vmem:[#allocation7 + $0x70] sm:$0xff]  ;;  %v240_v61 = vld [vmem:[#allocation7 + $0x78] sm:$0xff] }
  0x45   :  { %68 = vrot.lane.b32.xlu0 %v645_v1, %s580_s24  ;;  %v446_v62 = vpack.c.bf16 %v240_v61, %v239_v60 }
  0x47   :  { %458 = vmatpush3.bf16.msra.mxu1 %v426_v30 }
  0x48   :  { %70 = vrot.lane.b32.xlu1 %v651_v3, %s580_s24  ;;  %451 = vmatprep.subr.bf16.mxu1 %v428_v33 }
  0x49   :  { %64 = vrot.lane.b32.xlu0 %v647_v2, %s580_s24 }
  0x4b   :  { %459 = vmatpush3.bf16.msra.mxu1 %v430_v36 }
  0x4c   :  { %82 = vrot.lane.b32.xlu1 %v651_v3, %s579_s2  ;;  %452 = vmatprep.subr.bf16.mxu1 %v432_v37 }
  0x4d   :  { %76 = vrot.lane.b32.xlu0 %v647_v2, %s579_s2 }
  0x4f   :  { %460 = vmatpush3.bf16.msra.mxu1 %v434_v42 }
  0x50   :  { %453 = vmatprep.subr.bf16.mxu1 %v436_v43 }
  0x53   :  { %461 = vmatpush3.bf16.msra.mxu1 %v438_v48 }
  0x54   :  { %454 = vmatprep.subr.bf16.mxu1 %v440_v49 }
  0x57   :  { %462 = vmatpush3.bf16.msra.mxu1 %v442_v52 }
  0x58   :  { %455 = vmatprep.subr.bf16.mxu1 %v444_v59 }
  0x5b   :  { %463 = vmatpush3.bf16.msra.mxu1 %v446_v62 }
  0xaa   :  { %v93_v55 = vpop.permute.xlu1 %92 }
  0xab   :  { %v89_v53 = vpop.permute.xlu0 %88 }
  0xac   :  { %364 = vmatmul.mubr.msk.f32.vlgmr.msra.gmra.mrb[0].mxu0 %vm119_vm0, %v89_v53 }
  0xad   :  { %198 = vmatprep.mubr.f32.mxu0 %v577_v0  ;;  %419 = vmatpush3.bf16.msra.mxu0 %v418_v18 }
  0xae   :  { %421 = vmatprep.subr.bf16.mxu0 %v420_v21  ;;  %v95_v56 = vpop.permute.xlu1 %94 }
  0xaf   :  { %v91_v54 = vpop.permute.xlu0 %90 }
  0xb0   :  { %365 = vmatmul.mubr.msk.f32.gmra.mrb[2].mxu0 %vm119_vm0, %v91_v54 }
  0xb1   :  { %204 = vmatprep.mubr.f32.mxu0 %v577_v0  ;;  %423 = vmatpush3.bf16.msra.mxu0 %v422_v24 }
  0xb2   :  { %425 = vmatprep.subr.bf16.mxu0 %v424_v27  ;;  %v79_v4 = vpop.permute.xlu1 %78 }
  0xb3   :  { %v67_v63 = vpop.permute.xlu0 %66 }
  0xb4   :  { %366 = vmatmul.mubr.msk.f32.gmra.mrb[4].mxu0 %vm119_vm0, %v93_v55  ;;  %v102_v11 = vsel %vm100_vm1, %v653_v6, %v67_v63 }
  0xb5   :  { %210 = vmatprep.mubr.f32.mxu0 %v577_v0  ;;  %427 = vmatpush3.bf16.msra.mxu0 %v426_v30  ;;  %v107_v17 = vsel %vm105_vm2, %v102_v11, %v79_v4 }
  0xb6   :  { %429 = vmatprep.subr.bf16.mxu0 %v428_v33  ;;  %v81_v7 = vpop.permute.xlu1 %80  ;;  %v112_v19 = vsel %vm110_vm3, %v107_v17, %v91_v54 }
  0xb7   :  { %v69_v0 = vpop.permute.xlu0 %68 }
  0xb8   :  { %367 = vmatmul.mubr.msk.f32.gmra.mrb[6].mxu0 %vm119_vm0, %v95_v56  ;;  %v103_v18 = vsel %vm100_vm1, %v645_v1, %v69_v0 }
  0xb9   :  { %431 = vmatpush3.bf16.msra.mxu0 %v430_v36  ;;  %v108_v6 = vsel %vm105_vm2, %v103_v18, %v81_v7 }
  0xba   :  { %433 = vmatprep.subr.bf16.mxu0 %v432_v37  ;;  %v71_v12 = vpop.permute.xlu1 %70  ;;  %v113_v26 = vsel %vm110_vm3, %v108_v6, %v93_v55 }
  0xbb   :  { %v65_v5 = vpop.permute.xlu0 %64  ;;  %v104_v23 = vsel %vm100_vm1, %v651_v3, %v71_v12 }
  0xbc   :  { %v101_v8 = vsel %vm100_vm1, %v647_v2, %v65_v5 }
  0xbd   :  { %435 = vmatpush3.bf16.msra.mxu0 %v434_v42 }
  0xbe   :  { %437 = vmatprep.subr.bf16.mxu0 %v436_v43  ;;  %v83_v24 = vpop.permute.xlu1 %82 }
  0xbf   :  { %v77_v9 = vpop.permute.xlu0 %76  ;;  %v109_v1 = vsel %vm105_vm2, %v104_v23, %v83_v24 }
  0xc0   :  { %v106_v10 = vsel %vm105_vm2, %v101_v8, %v77_v9  ;;  %v114_v31 = vsel %vm110_vm3, %v109_v1, %v95_v56 }
  0xc1   :  { %439 = vmatpush3.bf16.msra.mxu0 %v438_v48  ;;  %v111_v13 = vsel %vm110_vm3, %v106_v10, %v89_v53 }
  0xc2   :  { %441 = vmatprep.subr.bf16.mxu0 %v440_v49 }
  0xc5   :  { %443 = vmatpush3.bf16.msra.mxu0 %v442_v52 }
  0xc6   :  { %445 = vmatprep.subr.bf16.mxu0 %v444_v59 }
  0xc9   :  { %447 = vmatpush3.bf16.msra.mxu0 %v446_v62 }
 0x17f   :  { %v194_v14 = vpop.f32.mrb[0].mxu0 }
 0x180   :  { %v217_v15 = vmul.f32 %v194_v14, %v111_v13  ;;  %v196_v16 = vpop.f32.mrb[1].mxu0 }
 0x181   :  { %v218_v2 = vmul.f32 %v196_v16, %v111_v13 }
 0x183   :  { %v200_v20 = vpop.f32.mrb[2].mxu0  ;;  %321 = vmatprep.mubr.f32.mxu0 %v218_v2 }
 0x184   :  { %v219_v21 = vmul.f32 %v200_v20, %v112_v19  ;;  %v202_v22 = vpop.f32.mrb[3].mxu0  ;;  %322 = vmatmul.mubr.f32.vlgmr.msra.gmra.mrb[8].mxu0 %v217_v15 }
 0x185   :  { %v220_v25 = vmul.f32 %v202_v22, %v112_v19 }
 0x187   :  { %v206_v27 = vpop.f32.mrb[4].mxu0  ;;  %326 = vmatprep.mubr.f32.mxu1 %v220_v25 }
 0x188   :  { %v221_v28 = vmul.f32 %v206_v27, %v113_v26  ;;  %v208_v29 = vpop.f32.mrb[5].mxu0  ;;  %327 = vmatmul.mubr.f32.vlgmr.msra.gmra.mrb[0].mxu1 %v219_v21 }
 0x189   :  { %v222_v30 = vmul.f32 %v208_v29, %v113_v26 }
 0x18b   :  { %v212_v32 = vpop.f32.mrb[6].mxu0  ;;  %331 = vmatprep.mubr.f32.mxu1 %v222_v30 }
 0x18c   :  { %v223_v33 = vmul.f32 %v212_v32, %v114_v31  ;;  %v214_v34 = vpop.f32.mrb[7].mxu0  ;;  %332 = vmatmul.mubr.f32.gmra.mrb[2].mxu1 %v221_v28 }
 0x18d   :  { %v224_v3 = vmul.f32 %v214_v34, %v114_v31 }
 0x18f   :  { %336 = vmatprep.mubr.f32.mxu1 %v224_v3 }
 0x190   :  { %337 = vmatmul.mubr.f32.gmra.mrb[4].mxu1 %v223_v33 }
 0x257   :  { %v400_v35 = vpop.f32.mrb[8].mxu0 }
 0x258   :  { %v401_v36 = vpop.f32.mrb[9].mxu0 }
 0x259   :  { %v402_v37 = vadd.f32 %v401_v36, %v400_v35 }
 0x25b   :  { %342 = vst [vmem:[#allocation8] sm:$0xff] %v402_v37  ;;  %v403_v38 = vpop.f32.mrb[0].mxu1 }
 0x25c   :  { %v404_v39 = vpop.f32.mrb[1].mxu1 }
 0x25d   :  { %v405_v40 = vadd.f32 %v404_v39, %v403_v38 }
 0x25f   :  { %343 = vst [vmem:[#allocation8 + $0x8] sm:$0xff] %v405_v40  ;;  %v406_v41 = vpop.f32.mrb[2].mxu1 }
 0x260   :  { %v407_v42 = vpop.f32.mrb[3].mxu1 }
 0x261   :  { %v408_v43 = vadd.f32 %v407_v42, %v406_v41 }
 0x263   :  { %344 = vst [vmem:[#allocation8 + $0x10] sm:$0xff] %v408_v43  ;;  %v409_v44 = vpop.f32.mrb[4].mxu1 }
 0x264   :  { %v410_v45 = vpop.f32.mrb[5].mxu1 }
 0x265   :  { %v411_v46 = vadd.f32 %v410_v45, %v409_v44 }
 0x267   :  { %345 = vst [vmem:[#allocation8 + $0x18] sm:$0xff] %v411_v46 }
 0x268   :  { %553 = shalt.err (!%p550_p0)
}
 0x269   :  { %s554_s30 = scalar_lea.hbm %s710_s3, 512 }
 0x26a   :  { %p555_p1 = scmp.ne.s32.totalorder %s710_s3, %s554_s30  ;;  %p558_p2 = scmp.lt.u32.totalorder %s554_s30, %s710_s3 }
 0x26c   :  { %p560_p3 = pnand %p558_p2, %p555_p1 }
 0x26e   :  { %563 = shalt.err (!%p560_p3)
}
 0x26f   :  { %357 = dma.vmem_to_hbm [thread:$0]  %s352_s26, 512, %s710_s3, [#allocation4], %s574_s1, %s574_s1, %s575_s9  }
 0x270   :  { %568 = dma.done.wait [#allocation4], 512  }
 0x271   :  { %569 = vsyncadd [#allocation4], 4294966784 }
 0x272   :  { %361 = vsyncpa [#allocation3], 1 }
 0x273   :  { %362 = vsyncpa [#allocation6], 1 }
 0x274   :  { %363 = vsyncpa [#allocation4], 1 }

</bundles_post_ra>
